<compile_context>
chip_gen: v7x
topology: tpu7x:2x2x1
jax: 0.10.0
libtpu: 0.0.40
codegen_flags: <defaults>
</compile_context>

<pallas_src>
import functools
import math

import jax
import jax.numpy as jnp
from jax.experimental import pallas as pl
from jax.experimental.pallas import tpu as pltpu


# ------------------------------ activation ----------------------------------

def _activation(h, ff_activation, approximate_gelu):
    if ff_activation == "relu":
        return jnp.maximum(h, 0.0)
    if ff_activation == "gelu":
        if approximate_gelu:
            # tanh approximation -> EUP slot (cheap next to MXU/vld slots)
            c = math.sqrt(2.0 / math.pi)
            return 0.5 * h * (1.0 + jnp.tanh(c * (h + 0.044715 * h * h * h)))
        # exact (erf) GELU, matching torch.nn.GELU()
        return 0.5 * h * (1.0 + jax.lax.erf(h * (1.0 / math.sqrt(2.0))))
    raise ValueError(f"unknown activation: {ff_activation}")


# ------------------------------ kernels --------------------------------------

def _make_resident_kernel(ff_activation, approximate_gelu):
    """1-D grid over token tiles; W1/b1/W2/b2 are DMA'd once and stay resident."""

    def kernel(x_ref, w1_ref, b1_ref, w2_ref, b2_ref, out_ref):
        x = x_ref[...]                                                 # (TM, D)
        h = jnp.dot(x, w1_ref[...], preferred_element_type=jnp.float32)
        h = _activation(h + b1_ref[...].astype(jnp.float32),
                        ff_activation, approximate_gelu)               # (TM, Fh) f32
        y = jnp.dot(h.astype(w2_ref.dtype), w2_ref[...],
                    preferred_element_type=jnp.float32)                # (TM, D) f32
        out_ref[...] = (y + b2_ref[...].astype(jnp.float32)).astype(out_ref.dtype)

    return kernel


def _make_tiled_kernel(ff_activation, approximate_gelu):
    """2-D grid (token tiles x Fh chunks); f32 accumulator over the Fh reduction."""

    def kernel(x_ref, w1_ref, b1_ref, w2_ref, b2_ref, out_ref, acc_ref):
        f = pl.program_id(1)                         # Fh-chunk index (reduction)

        @pl.when(f == 0)
        def _():
            acc_ref[...] = jnp.zeros_like(acc_ref)

        x = x_ref[...]                                                 # (TM, D)
        h = jnp.dot(x, w1_ref[...], preferred_element_type=jnp.float32)
        h = _activation(h + b1_ref[...].astype(jnp.float32),
                        ff_activation, approximate_gelu)               # (TM, TFh)
        acc_ref[...] += jnp.dot(h.astype(w2_ref.dtype), w2_ref[...],
                                preferred_element_type=jnp.float32)

        @pl.when(f == pl.num_programs(1) - 1)
        def _():
            out_ref[...] = (acc_ref[...] + b2_ref[...].astype(jnp.float32)
                            ).astype(out_ref.dtype)

    return kernel


# --------------------------- tile / mode selection ---------------------------

def _sublane_pack(dtype):
    # f32 -> 8 sublanes, bf16 -> 16, int8/fp8 -> 32 (sub-32-bit packs sublanes)
    return max(8, 32 // jnp.dtype(dtype).itemsize)


def _vmem_budget_bytes():
    try:
        cap = int(pltpu.get_tpu_info().vmem_capacity_bytes)
    except Exception:
        cap = 64 * 1024 * 1024   # v7x-sized lower bound: safe on every generation
    budget = int(cap * 0.55)     # tile-plan budget (leave headroom, never budget to cap)
    limit = int(cap * 0.70)      # scoped-VMEM limit handed to Mosaic
    return budget, limit


def _choose_token_tile(F_, pack, tm_cap):
    """TM: multiple of `pack`, <= tm_cap, preferring exact divisors of F_
    (no pad copy / output slice) and >= 2 token tiles (v7x has 2 TensorCores)."""
    tm_cap = max(pack, (tm_cap // pack) * pack)
    if F_ <= pack:
        return pack
    t = min(tm_cap, (F_ // pack) * pack)
    while t >= pack:
        if F_ % t == 0:
            if F_ // t < 2 and t % (2 * pack) == 0:
                t //= 2          # make sure both TCs get a tile on megacore parts
            return t
        t -= pack
    # no aligned divisor: pad the token axis (zero-fill, sliced off afterwards)
    return min(tm_cap, ((F_ + pack - 1) // pack) * pack)


# ------------------------------ wrapper (JAX) --------------------------------

def expert_forward(x_BLD, params, *, ff_activation, dropout=0.0,
                   approximate_gelu=False, tm=512, tfh_max=512,
                   force_mode=None):
    """Pallas forward of Expert: Linear -> act -> Linear (-> Dropout=identity).

    Eval-mode only (dropout is the identity).
    """
    del dropout  # TODO(synk): training-mode dropout not implemented (eval / p=0.0)

    B, L, D = x_BLD.shape
    W1, b1, W2, b2 = params["W1"], params["b1"], params["W2"], params["b2"]
    Fh = W1.shape[1]
    F_ = B * L
    x_FD = x_BLD.reshape(F_, D)

    xb = jnp.dtype(x_BLD.dtype).itemsize
    ob = xb
    wb = jnp.dtype(W1.dtype).itemsize
    bb = jnp.dtype(b1.dtype).itemsize
    pack = _sublane_pack(x_BLD.dtype)
    budget, vmem_limit = _vmem_budget_bytes()

    # Resident-mode footprint (conservative: count double buffers on everything).
    weight_res_bytes = 2 * (D * Fh * wb + Fh * bb + Fh * D * wb + D * bb)
    per_row_res = 2 * D * xb + 2 * D * ob + 2 * Fh * 4 + D * 4   # x, out, h(f32), y(f32)
    tm_fit_res = ((budget - weight_res_bytes) // per_row_res
                  if budget > weight_res_bytes else 0)

    mode = force_mode or ("resident" if tm_fit_res >= pack else "tiled")

    if mode == "resident":
        # ---- weights fully VMEM-resident; weight HBM traffic = 1x ----------
        TM = _choose_token_tile(F_, pack, min(tm, int(tm_fit_res)) if tm_fit_res else tm)
        Fp = pl.cdiv(F_, TM) * TM
        x_in = x_FD if Fp == F_ else jnp.pad(x_FD, ((0, Fp - F_), (0, 0)))
        grid = (Fp // TM,)
        in_specs = [
            pl.BlockSpec((TM, D), lambda t: (t, 0)),    # x: streamed per token tile
            pl.BlockSpec((D, Fh), lambda t: (0, 0)),    # W1: DMA'd once, resident
            pl.BlockSpec((1, Fh), lambda t: (0, 0)),    # b1: resident
            pl.BlockSpec((Fh, D), lambda t: (0, 0)),    # W2: resident
            pl.BlockSpec((1, D), lambda t: (0, 0)),     # b2: resident
        ]
        out_specs = pl.BlockSpec((TM, D), lambda t: (t, 0))
        kernel = _make_resident_kernel(ff_activation, approximate_gelu)
        scratch = []
        dims = ("parallel",)
    else:
        # ---- 2-D grid: maximize TM first, then pick TFh (divisor, mult of 128) ----
        tfh_cands = [d for d in range(128, min(Fh, tfh_max) + 1, 128) if Fh % d == 0]
        tfh_cands = sorted(tfh_cands, reverse=True) or [Fh]
        best = None
        for tfh_c in tfh_cands:
            fixed = 2 * (D * tfh_c * wb + tfh_c * bb + tfh_c * D * wb + D * bb)
            per_row = 2 * D * xb + 2 * D * ob + D * 4 + 2 * tfh_c * 4
            fit = (budget - fixed) // per_row if budget > fixed else 0
            if fit < pack:
                continue
            tm_c = _choose_token_tile(F_, pack, min(tm, int(fit)))
            if best is None or (tm_c, tfh_c) > best:
                best = (tm_c, tfh_c)
        if best is None:
            best = (pack, tfh_cands[-1])    # smallest tiles; let the compiler decide
        TM, TFh = best

        Fp = pl.cdiv(F_, TM) * TM
        x_in = x_FD if Fp == F_ else jnp.pad(x_FD, ((0, Fp - F_), (0, 0)))
        grid = (Fp // TM, max(1, Fh // TFh))
        in_specs = [
            pl.BlockSpec((TM, D), lambda t, f: (t, 0)),     # x (per token tile)
            pl.BlockSpec((D, TFh), lambda t, f: (0, f)),    # W1 chunk
            pl.BlockSpec((1, TFh), lambda t, f: (0, f)),    # b1 chunk
            pl.BlockSpec((TFh, D), lambda t, f: (f, 0)),    # W2 chunk
            pl.BlockSpec((1, D), lambda t, f: (0, 0)),      # b2 (resident)
        ]
        out_specs = pl.BlockSpec((TM, D), lambda t, f: (t, 0))
        kernel = _make_tiled_kernel(ff_activation, approximate_gelu)
        scratch = [pltpu.VMEM((TM, D), jnp.float32)]
        dims = ("parallel", "arbitrary")

    flops = 4 * F_ * D * Fh
    transc = F_ * Fh if ff_activation == "gelu" else 0
    bytes_accessed = (F_ * D * xb + F_ * D * ob
                      + D * Fh * wb + Fh * bb + Fh * D * wb + D * bb)

    out = pl.pallas_call(
        kernel,
        out_shape=jax.ShapeDtypeStruct((Fp, D), x_BLD.dtype),
        grid_spec=pltpu.PrefetchScalarGridSpec(
            num_scalar_prefetch=0,
            grid=grid,
            in_specs=in_specs,
            out_specs=out_specs,
            scratch_shapes=scratch,
        ),
        compiler_params=pltpu.CompilerParams(
            dimension_semantics=dims,
            vmem_limit_bytes=vmem_limit),
        cost_estimate=pl.CostEstimate(flops=flops, transcendentals=transc,
                                      bytes_accessed=bytes_accessed),
    )(x_in, W1, b1, W2, b2)

    if Fp != F_:
        out = out[:F_]
    return out.reshape(B, L, D)


# ------------------------------- reference -----------------------------------

def expert_reference(x_BLD, params, *, ff_activation, approximate_gelu=False):
    """Pure-JAX reference (f32 math, same hidden-cast as the kernel)."""
    B, L, D = x_BLD.shape
    f32 = jnp.float32
    x = x_BLD.reshape(B * L, D).astype(f32)
    h = _activation(x @ params["W1"].astype(f32) + params["b1"].astype(f32),
                    ff_activation, approximate_gelu)
    h = h.astype(params["W2"].dtype).astype(f32)   # match kernel's pre-2nd-matmul cast
    y = h @ params["W2"].astype(f32) + params["b2"].astype(f32)
    return y.reshape(B, L, D).astype(x_BLD.dtype)


def make_params(key, D, Fh, scale=0.05, dtype=jnp.float32):
    k1, k2, k3, k4 = jax.random.split(key, 4)
    return {
        "W1": (jax.random.normal(k1, (D, Fh)) * scale).astype(dtype),
        "b1": (jax.random.normal(k2, (1, Fh)) * scale).astype(dtype),
        "W2": (jax.random.normal(k3, (Fh, D)) * scale).astype(dtype),
        "b2": (jax.random.normal(k4, (1, D)) * scale).astype(dtype),
    }


def _max_err(a, b):
    return float(jnp.max(jnp.abs(a.astype(jnp.float32) - b.astype(jnp.float32))))


# --------------------------------- main ---------------------------------------

if __name__ == "__main__":
    key = jax.random.PRNGKey(0)
    ks = jax.random.split(key, 8)

    # 1) module defaults: hid_dim=32, ff_mult=2, relu, dropout=0.0 (identity)
    B, L, D, mult = 2, 8, 32, 2
    params = make_params(ks[0], D, mult * D)
    x = jax.random.normal(ks[1], (B, L, D), dtype=jnp.float32)
    out = jax.block_until_ready(expert_forward(x, params, ff_activation="relu"))
    ref = expert_reference(x, params, ff_activation="relu")
    assert out.shape == (B, L, D)
    err = _max_err(out, ref)
    assert err < 2e-3, f"case1 (relu, f32) mismatch: {err}"

    # 2) lane-aligned f32 gelu — resident-weights path, 2 token tiles
    B, L, D, mult = 2, 256, 128, 4
    params2 = make_params(ks[2], D, mult * D)
    x2 = jax.random.normal(ks[3], (B, L, D), dtype=jnp.float32)
    out2 = jax.block_until_ready(expert_forward(x2, params2, ff_activation="gelu"))
    ref2 = expert_reference(x2, params2, ff_activation="gelu")
    err2 = _max_err(out2, ref2)
    assert out2.shape == (B, L, D)
    assert err2 < 2e-3, f"case2 (gelu, resident) mismatch: {err2}"

    # 3) same problem forced through the tiled (Fh-reduction) path
    out3 = jax.block_until_ready(
        expert_forward(x2, params2, ff_activation="gelu",
                       force_mode="tiled", tfh_max=256))
    err3 = _max_err(out3, ref2)
    assert err3 < 2e-3, f"case3 (gelu, tiled) mismatch: {err3}"

    # 4) bf16 params + activations (bf16 MXU dots, f32 accumulation, pack=16)
    B, L, D, mult = 2, 64, 256, 4
    params4 = make_params(ks[4], D, mult * D, dtype=jnp.bfloat16)
    x4 = jax.random.normal(ks[5], (B, L, D), dtype=jnp.float32).astype(jnp.bfloat16)
    out4 = jax.block_until_ready(expert_forward(x4, params4, ff_activation="gelu"))
    ref4 = expert_reference(x4, params4, ff_activation="gelu")
    err4 = _max_err(out4, ref4)
    assert out4.shape == (B, L, D)
    assert err4 < 2e-2, f"case4 (gelu, bf16) mismatch: {err4}"

    print("KERNEL_OK")
</pallas_src>

<mosaic_0001>
module attributes {stable_mosaic.version = 11 : i64} {
  func.func @kernel(%arg0: i32, %arg1: memref<8x32xf32, #tpu.memory_space<vmem>>, %arg2: memref<32x64xf32, #tpu.memory_space<vmem>>, %arg3: memref<1x64xf32, #tpu.memory_space<vmem>>, %arg4: memref<64x32xf32, #tpu.memory_space<vmem>>, %arg5: memref<1x32xf32, #tpu.memory_space<vmem>>, %arg6: memref<8x32xf32, #tpu.memory_space<vmem>>) attributes {dimension_semantics = [#tpu.dimension_semantics<parallel>], iteration_bounds = array<i64: 2>, scalar_prefetch = 0 : i64, scratch_operands = 0 : i64, tpu.core_type = #tpu.core_type<tc>, window_params = [{transform_indices = @transform_0, window_bounds = array<i64: 8, 32>}, {pipeline_mode = #tpu.pipeline_mode<synchronous>, transform_indices = @transform_1, window_bounds = array<i64: 32, 64>}, {pipeline_mode = #tpu.pipeline_mode<synchronous>, transform_indices = @transform_2, window_bounds = array<i64: 1, 64>}, {pipeline_mode = #tpu.pipeline_mode<synchronous>, transform_indices = @transform_3, window_bounds = array<i64: 64, 32>}, {pipeline_mode = #tpu.pipeline_mode<synchronous>, transform_indices = @transform_4, window_bounds = array<i64: 1, 32>}, {transform_indices = @transform_5, window_bounds = array<i64: 8, 32>}]} {
    %c0 = arith.constant 0 : index
    %c0_0 = arith.constant 0 : index
    %0 = vector.load %arg1[%c0, %c0_0] : memref<8x32xf32, #tpu.memory_space<vmem>>, vector<8x32xf32>
    %c0_1 = arith.constant 0 : index
    %c0_2 = arith.constant 0 : index
    %1 = vector.load %arg2[%c0_1, %c0_2] : memref<32x64xf32, #tpu.memory_space<vmem>>, vector<32x64xf32>
    %cst = arith.constant dense<0.000000e+00> : vector<8x64xf32>
    %2 = tpu.matmul %0, %1, %cst {dimension_numbers = #tpu.dot_dimension_numbers<[1], [0], [0], [1], [0, 0, 1, 1], [], []>} : vector<8x32xf32>, vector<32x64xf32>, vector<8x64xf32> -> vector<8x64xf32>
    %c0_3 = arith.constant 0 : index
    %c0_4 = arith.constant 0 : index
    %3 = vector.load %arg3[%c0_3, %c0_4] : memref<1x64xf32, #tpu.memory_space<vmem>>, vector<1x64xf32>
    %4 = vector.broadcast %3 : vector<1x64xf32> to vector<8x64xf32>
    %5 = arith.addf %2, %4 : vector<8x64xf32>
    %cst_5 = arith.constant 0.000000e+00 : f32
    %6 = vector.broadcast %cst_5 : f32 to vector<8x64xf32>
    %7 = arith.maximumf %5, %6 : vector<8x64xf32>
    %c0_6 = arith.constant 0 : index
    %c0_7 = arith.constant 0 : index
    %8 = vector.load %arg4[%c0_6, %c0_7] : memref<64x32xf32, #tpu.memory_space<vmem>>, vector<64x32xf32>
    %cst_8 = arith.constant dense<0.000000e+00> : vector<8x32xf32>
    %9 = tpu.matmul %7, %8, %cst_8 {dimension_numbers = #tpu.dot_dimension_numbers<[1], [0], [0], [1], [0, 0, 1, 1], [], []>} : vector<8x64xf32>, vector<64x32xf32>, vector<8x32xf32> -> vector<8x32xf32>
    %c0_9 = arith.constant 0 : index
    %c0_10 = arith.constant 0 : index
    %10 = vector.load %arg5[%c0_9, %c0_10] : memref<1x32xf32, #tpu.memory_space<vmem>>, vector<1x32xf32>
    %11 = vector.broadcast %10 : vector<1x32xf32> to vector<8x32xf32>
    %12 = arith.addf %9, %11 : vector<8x32xf32>
    %c0_11 = arith.constant 0 : index
    %c0_12 = arith.constant 0 : index
    %13 = vector.load %arg6[%c0_11, %c0_12] : memref<8x32xf32, #tpu.memory_space<vmem>>, vector<8x32xf32>
    tpu.vector_store %arg6[%c0_11, %c0_12], %12 {strides = array<i32>} : memref<8x32xf32, #tpu.memory_space<vmem>>, vector<8x32xf32>,
    return
  }
  func.func @transform_0(%arg0: i32) -> (i32, i32) {
    %c0_i32 = arith.constant 0 : i32
    %c0_i32_0 = arith.constant 0 : i32
    return %arg0, %c0_i32 : i32, i32
  }
  func.func @transform_1(%arg0: i32) -> (i32, i32) {
    %c0_i32 = arith.constant 0 : i32
    %c0_i32_0 = arith.constant 0 : i32
    %c0_i32_1 = arith.constant 0 : i32
    return %c0_i32, %c0_i32_0 : i32, i32
  }
  func.func @transform_2(%arg0: i32) -> (i32, i32) {
    %c0_i32 = arith.constant 0 : i32
    %c0_i32_0 = arith.constant 0 : i32
    %c0_i32_1 = arith.constant 0 : i32
    return %c0_i32, %c0_i32_0 : i32, i32
  }
  func.func @transform_3(%arg0: i32) -> (i32, i32) {
    %c0_i32 = arith.constant 0 : i32
    %c0_i32_0 = arith.constant 0 : i32
    %c0_i32_1 = arith.constant 0 : i32
    return %c0_i32, %c0_i32_0 : i32, i32
  }
  func.func @transform_4(%arg0: i32) -> (i32, i32) {
    %c0_i32 = arith.constant 0 : i32
    %c0_i32_0 = arith.constant 0 : i32
    %c0_i32_1 = arith.constant 0 : i32
    return %c0_i32, %c0_i32_0 : i32, i32
  }
  func.func @transform_5(%arg0: i32) -> (i32, i32) {
    %c0_i32 = arith.constant 0 : i32
    %c0_i32_0 = arith.constant 0 : i32
    return %arg0, %c0_i32 : i32, i32
  }
}

</mosaic_0001>

<bundles_post_ra>
// kernel: tpu_custom_call.1
= control target key start
LH: loop header
LB: loop body
LE: loop exit
PB: predicated region body
PF: predicated region fallthrough
CT: control target
= control target key end

     0   :  { %10 = vsyncpa [#allocation3], 0  ;;  %s830_s0 = inlined_call_operand.vmem [shape: f32[16,32], index: 0, kind: input, shape index: {}]   ;;  %s831_s1 = inlined_call_operand.vmem [shape: f32[32,64], index: 1, kind: input, shape index: {}]   ;;  %s832_s2 = inlined_call_operand.vmem [shape: f32[1,64], index: 2, kind: input, shape index: {}]   ;;  %s833_s3 = inlined_call_operand.vmem [shape: f32[64,32], index: 3, kind: input, shape index: {}]   ;;  %s834_s4 = inlined_call_operand.vmem [shape: f32[1,32], index: 4, kind: input, shape index: {}]   ;;  %s835_s5 = inlined_call_operand.hbm [shape: f32[16,32], index: 5, kind: output, shape index: {}]  }
   0x1   :  { %12 = vsyncpa [#allocation3 + $0x1], 0  ;;  %s686_s18 = smov 0   ;;  %s688_s19 = smov 0  }
   0x2   :  { %s690_s20 = smov 0   ;;  %s692_s21 = smov 0  }
   0x3 LB: > { %s707_s22 = sadd.s32 4294967295, %s650_s21   ;;  %s470_s23 = sadd.s32 4294967294, %s650_s21   ;;  %s650_s21 = sphi %s692_s21, %s841_s21   ;;  %s646_s20 = sphi %s690_s20, %s840_s20   ;;  %s642_s19 = sphi %s688_s19, %s839_s19   ;;  %s638_s18 = sphi %s686_s18, %s838_s18  }
   0x4   : > { %s711_s24 = sadd.s32 1, %s650_s21   ;;  %s135_s25 = sadd.s32 1, %s646_s20 }
   0x5   : > { %s132_s26 = ssub.s32 %s650_s21, %s711_s24  ;;  %p145_p0 = scmp.ne.s32.totalorder %s646_s20, %s642_s19 }
   0x6   : > { %p133_p1 = scmp.eq.s32.totalorder %s132_s26, 0  ;;  %p146_p2 = scmp.eq.s32.totalorder %s707_s22, 1 }
   0x7   : > { %p151_p3 = scmp.ne.s32.totalorder %s642_s19, %s638_s18  ;;  %p152_p4 = scmp.eq.s32.totalorder %s470_s23, 1 }
   0x8   : > { %s722_s27 = scalar_select %p133_p1, %s646_s20, %s135_s25  }
   0x9   : > { %p724_p5 = por %p146_p2, %p145_p0  ;;  %p728_p6 = por %p152_p4, %p151_p3 }
   0xa   : > { %p473_p7 = scmp.ge.s32.totalorder %s650_s21, 1  ;;  %p189_p8 = scmp.lt.s32.totalorder %s650_s21, 3 }
   0xc   : > { %p190_p9 = pnand %p473_p7, %p189_p8 }
   0xd   : > { %v221_v0 = vld [vmem:[%s831_s1] sm:$0xff] (!%p190_p9)  ;;  %v222_v1 = vld [vmem:[%s831_s1 + $0x8] sm:$0xff] (!%p190_p9)  ;;  %v223_v2 = vld [vmem:[%s831_s1 + $0x10] sm:$0xff] (!%p190_p9)  ;;  %v652_v3 = vmov (!%p190_p9), 0.0|0.0   ;;  %vm653_vm0 = vmmov (!%p190_p9), 0   ;;  %v654_v6 = vmov (!%p190_p9), 0.0  }
   0xe   : > { %193 = sbr.rel (%p190_p9) target bundleno = 470 (0x1d6), region = 40  ;;  %528 = vmatprep.subr.bf16.mxu0 (!%p190_p9), %v652_v3  ;;  %v529_v4 = vpack.c.bf16 (!%p190_p9), %v222_v1, %v221_v0  ;;  %v224_v5 = vld [vmem:[%s831_s1 + $0x18] sm:$0xff] (!%p190_p9)  ;;  %506 = vmatprep.mubr.msk.f32.mxu0 (!%p190_p9), %vm653_vm0, %v654_v6  ;;  %p216_p10 = scmp.lt.s32.totalorder (!%p190_p9), %s707_s22, 1  ;;  %v307_v7 = vld [vmem:[%s833_s3] sm:$0xff] (!%p190_p9)  ;;  %v308_v8 = vld [vmem:[%s833_s3 + $0x8] sm:$0xff] (!%p190_p9)  ;;  %vm232_vm1 = vcmask (!%p190_p9), 261120  }
   0xf   : > { %534 = vmatprep.subr.bf16.mxu1 (!%p190_p9), %v652_v3  ;;  %v535_v9 = vpack.c.bf16 (!%p190_p9), %v308_v8, %v307_v7  ;;  %v309_v10 = vld [vmem:[%s833_s3 + $0x10] sm:$0xff] (!%p190_p9)  ;;  %v310_v11 = vld [vmem:[%s833_s3 + $0x18] sm:$0xff] (!%p190_p9)  ;;  %525 = vmatprep.mubr.msk.f32.mxu1 (!%p190_p9), %vm653_vm0, %v654_v6  ;;  %v532_v12 = vpack.c.bf16 (!%p190_p9), %v224_v5, %v223_v2  ;;  %v311_v14 = vld [vmem:[%s833_s3 + $0x20] sm:$0xff] (!%p190_p9)  ;;  %vm322_vm2 = vcmask (!%p190_p9), 523264   ;;  %s213_s26 = sand.u32 (!%p190_p9), 1, %s642_s19   ;;  %s481_s8 = sshll.u32 (!%p190_p9), %s707_s22, 7 }
  0x10   : > { %530 = vmatpush3.bf16.msra.mxu0 (!%p190_p9), %v529_v4  ;;  %v538_v13 = vpack.c.bf16 (!%p190_p9), %v310_v11, %v309_v10  ;;  %v312_v15 = vld [vmem:[%s833_s3 + $0x28] sm:$0xff] (!%p190_p9)  ;;  %v313_v18 = vld [vmem:[%s833_s3 + $0x30] sm:$0xff] (!%p190_p9)  ;;  %v314_v19 = vld [vmem:[%s833_s3 + $0x38] sm:$0xff] (!%p190_p9)  ;;  %s398_s14 = scalar_lea.sflag (!%p190_p9), [#allocation3], %s213_s26 }
  0x11   : > { %531 = vmatprep.subr.bf16.mxu0 (!%p190_p9), %v652_v3  ;;  %536 = vmatpush3.bf16.msra.mxu1 (!%p190_p9), %v535_v9  ;;  %v541_v17 = vpack.c.bf16 (!%p190_p9), %v312_v15, %v311_v14  ;;  %v544_v20 = vpack.c.bf16 (!%p190_p9), %v314_v19, %v313_v18  ;;  %v476_v21 = vld [vmem:[%s832_s2] ss:$0 sm:$0xff] (!%p190_p9) }
  0x12   : > { %537 = vmatprep.subr.bf16.mxu1 (!%p190_p9), %v652_v3  ;;  %v478_v26 = vld [vmem:[%s834_s4] ss:$0 sm:$0xff] (!%p190_p9) }
  0x14   : > { %533 = vmatpush3.bf16.msra.mxu0 (!%p190_p9), %v532_v12 }
  0x15   : > { %s217_s30 = scalar_select %p216_p10, %s707_s22, 1  ;;  %539 = vmatpush3.bf16.msra.mxu1 %v538_v13 }
  0x16   : > { %540 = vmatprep.subr.bf16.mxu1 %v652_v3  ;;  %s655_s22 = smov [#allocation2]  }
  0x17   : > { %s475_s6 = sshll.u32 %s217_s30, 3  ;;  %s474_s30 = sshll.u32 %s213_s26, 3 }
  0x18   : > { %s219_s13 = scalar_lea.vmem %s830_s0, %s475_s6  ;;  %s215_s9 = scalar_lea.vmem [#allocation2], %s474_s30 }
  0x19   : > { %v220_v16 = vld [vmem:[%s219_s13] sm:$0xff]  ;;  %542 = vmatpush3.bf16.msra.mxu1 %v541_v17  ;;  %s411_s10 = sshll.u32 %s215_s9, 4  ;;  %s787_s13 = scalar_lea.hbm %s835_s5, %s481_s8  ;;  %s789_s10 = int_to_ptr.vmem [resolvable:$true] %s411_s10 }
  0x1a   : > { %507 = vmatmul.mubr.msk.f32.vlgmr.msra.gmra.mrb[0].mxu0 %vm232_vm1, %v220_v16  ;;  %543 = vmatprep.subr.bf16.mxu1 %v652_v3  ;;  %s588_s15 = scalar_lea.vmem %s789_s10, 128  ;;  %s592_s16 = sshll.u32 %s655_s22, 4  ;;  %s593_s16 = int_to_ptr.vmem [resolvable:$false] %s592_s16 }
  0x1b   : > { %p589_p11 = scmp.ne.s32.totalorder %s789_s10, %s588_s15  ;;  %s594_s17 = scalar_lea.vmem %s593_s16, 256 }
  0x1c   : > { %p595_p0 = scmp.lt.s32.totalorder %s789_s10, %s593_s16  ;;  %p596_p1 = scmp.lt.s32.totalorder %s594_s17, %s588_s15 }
  0x1d   : > { %545 = vmatpush3.bf16.msra.mxu1 %v544_v20  ;;  %p590_p12 = pnand %p589_p11, %p724_p5 }
  0x1e   : > { %p597_p2 = por %p596_p1, %p595_p0 }
  0x1f   : > { %p591_p13 = pneg %p590_p12 }
  0x21   : > { %p598_p3 = pnand %p597_p2, %p591_p13 }
  0xed   : > { %v302_v22 = vpop.f32.mrb[0].mxu0 }
  0xee   : > { %v303_v23 = vadd.f32 %v476_v21, %v302_v22  ;;  %v508_v24 = vpop.f32.mrb[1].mxu0 }
  0xf0   : > { %v306_v25 = vmax.f32 %v303_v23, 0.0 }
  0xf2   : > { %526 = vmatmul.mubr.msk.f32.vlgmr.msra.gmra.mrb[0].mxu1 %vm322_vm2, %v306_v25 }
 0x1c5   : > { %v392_v27 = vpop.f32.mrb[0].mxu1 }
 0x1c6   : > { %v393_v28 = vadd.f32 %v478_v26, %v392_v27  ;;  %v527_v29 = vpop.f32.mrb[1].mxu1 }
 0x1c8   : > { %396 = vst.msk [vmem:[%s215_s9] sm:$0xff] %vm232_vm1, %v393_v28 }
 0x1c9   : > { %601 = shalt.err (!%p598_p3)
}
 0x1ca   : > { %s602_s23 = scalar_lea.hbm %s787_s13, 128  ;;  %s606_s30 = scalar_lea.hbm %s835_s5, 256 }
 0x1cb   : > { %p603_p4 = scmp.ne.s32.totalorder %s787_s13, %s602_s23  ;;  %p607_p9 = scmp.lt.u32.totalorder %s787_s13, %s835_s5 }
 0x1cc   : > { %p608_p10 = scmp.lt.u32.totalorder %s606_s30, %s602_s23  ;;  %p610_p12 = scmp.lt.u32.totalorder %s602_s23, %s787_s13 }
 0x1cd   : > { %p604_p7 = pnand %p603_p4, %p724_p5 }
 0x1ce   : > { %p609_p11 = por %p608_p10, %p607_p9 }
 0x1cf   : > { %p605_p8 = pneg %p604_p7 }
 0x1d0   : > { %p611_p13 = por %p610_p12, %p609_p11 }
 0x1d2   : > { %p612_p0 = pnand %p611_p13, %p605_p8 }
 0x1d4   : > { %615 = shalt.err (!%p612_p0)
}
 0x1d5   : > { %546 = dma.vmem_to_hbm [thread:$0]  (%p724_p5), %s789_s10, 128, %s787_s13, %s398_s14  }
 0x1d6 PF: > { %p552_p1 = scmp.ge.s32.totalorder %s650_s21, 2  ;;  %s423_s8 = sand.u32 1, %s638_s18  }
 0x1d7   : > { %s424_s9 = scalar_lea.sflag [#allocation3], %s423_s8 }
 0x1d8   : > { %p549_p2 = pnand %p552_p1, %p728_p6 }
 0x1da   : > { %633 = dma.done.wait (!%p549_p2), %s424_s9, 128  }
 0x1db   : > { %635 = vsyncadd (!%p549_p2), %s424_s9, 4294967168  ;;  %p15_p3 = scmp.ge.s32.totalorder %s711_s24, 4   ;;  %s838_s18 = smov %s642_s19 }
 0x1dc   : > { %s839_s19 = smov %s646_s20  ;;  %s840_s20 = smov %s722_s27 }
 0x1dd   : > { %s841_s21 = smov %s711_s24  ;;  %17 = sbr.rel (!%p15_p3) target bundleno = 3 (0x3), region = 75 }
 0x1e4   :  { %429 = vsyncpa [#allocation3], 1 }
 0x1e5   :  { %431 = vsyncpa [#allocation3 + $0x1], 1 }

</bundles_post_ra>
